<compile_context>
chip_gen: v6e
topology: v6e:2x2x1
jax: 0.10.0
libtpu: 0.0.40
codegen_flags: <defaults>
</compile_context>

<pallas_src>
import functools

import jax
import jax.numpy as jnp
from jax.experimental import pallas as pl
from jax.experimental.pallas import tpu as pltpu


def _round_up(a: int, m: int) -> int:
    return ((a + m - 1) // m) * m


def _tpu_hints():
    """Best-effort generation detection; safe fallbacks everywhere."""
    kind = ""
    try:
        kind = jax.devices()[0].device_kind.lower()
    except Exception:
        pass
    is_v7 = "v7" in kind
    bf16_mxu = is_v7 or ("v6" in kind)
    try:
        vmem_cap = int(pltpu.get_tpu_info().vmem_capacity_bytes)
    except Exception:
        vmem_cap = (64 << 20) if is_v7 else (128 << 20)
    return is_v7, bf16_mxu, vmem_cap


def _make_encoder_kernel(num_layers: int, d_latent: int, eps: float,
                         matmul_dtype, split_halves: bool):
    """Builds a Pallas kernel fusing the whole MLP + softplus head."""

    def kernel(*refs):
        x_ref = refs[0]
        param_refs = refs[1: 1 + 2 * num_layers]
        out_ref = refs[1 + 2 * num_layers]

        h = x_ref[...].astype(jnp.float32)
        for li in range(num_layers):
            w = param_refs[2 * li][...]
            b = param_refs[2 * li + 1][...].astype(jnp.float32)
            # MXU operands in matmul_dtype (bf16 on v6e/v7x), f32 accumulate.
            lhs = h.astype(matmul_dtype)
            if w.dtype != matmul_dtype:
                w = w.astype(matmul_dtype)
            h = jnp.dot(lhs, w, preferred_element_type=jnp.float32) + b
            if li < num_layers - 1:
                # SiLU = x * sigmoid(x): sigmoid -> EUP, mul -> VPU, all f32.
                h = h * jax.nn.sigmoid(h)

        if split_halves:
            # d_latent is a multiple of 128: static lane-aligned split, softplus
            # only over the logvar half, two full-lane stores.
            mu = h[:, :d_latent]
            scale = jax.nn.softplus(h[:, d_latent:2 * d_latent]) + eps
            out_ref[:, :d_latent] = mu.astype(out_ref.dtype)
            out_ref[:, d_latent:2 * d_latent] = scale.astype(out_ref.dtype)
        else:
            # Non-lane-aligned split: column mask avoids a mid-vreg lane split;
            # a single lane-dense store (output width padded to 128 lanes).
            cols = jax.lax.broadcasted_iota(jnp.int32, h.shape, 1)
            out = jnp.where(cols < d_latent, h, jax.nn.softplus(h) + eps)
            out_ref[...] = out.astype(out_ref.dtype)

    return kernel


@functools.partial(jax.jit, static_argnames=("eps", "matmul_dtype", "tb_cap"))
def encoder_forward(x, params, eps: float = 1e-8, matmul_dtype=None,
                    tb_cap: int | None = None):
    """params: flat tuple (W0, b0, W1, b1, ...) with W_i shaped [in, out]."""
    is_v7, bf16_mxu, vmem_cap = _tpu_hints()
    if matmul_dtype is None:
        matmul_dtype = jnp.bfloat16 if bf16_mxu else jnp.float32

    num_layers = len(params) // 2
    B, D_in = x.shape
    d_out_true = params[-1].shape[-1]          # == 2 * d_latent
    d_latent = d_out_true // 2

    # Normalize biases to [1, out]; store weights in matmul_dtype (halves
    # weight DMA when bf16), biases stay f32 for the f32 bias-add.
    params_k = []
    for idx, p in enumerate(params):
        if idx % 2 == 1:                       # bias
            if p.ndim == 1:
                p = p.reshape(1, -1)
            p = p.astype(jnp.float32)
        else:                                  # weight
            p = p.astype(matmul_dtype)
        params_k.append(p)

    # Lane-dense output: pad the final layer's output width to a multiple of
    # 128 with zero columns (wrapper slices mu/scale afterwards).
    out_w = _round_up(d_out_true, 128)
    if out_w != d_out_true:
        w_last = jnp.pad(params_k[-2], ((0, 0), (0, out_w - d_out_true)))
        b_last = jnp.pad(params_k[-1], ((0, 0), (0, out_w - d_out_true)))
        params_k[-2], params_k[-1] = w_last, b_last
    params_k = tuple(params_k)
    split_halves = (d_latent % 128 == 0) and (out_w == d_out_true)

    # ---- batch tiling -----------------------------------------------------
    cap = tb_cap if tb_cap is not None else (256 if is_v7 else 512)
    cap = max(8, _round_up(cap, 8))
    TB = min(_round_up(B, 8), cap)

    max_width = max(max(int(p.shape[-1]) for p in params_k), D_in)
    param_bytes = sum(int(p.size) * p.dtype.itemsize for p in params_k)

    def _est(tb):
        io = 2 * tb * (D_in * x.dtype.itemsize + out_w * 4)   # double-buffered tiles
        act = 4 * tb * max_width * 4                           # activation headroom
        return param_bytes + io + act                          # params single-buffered

    vmem_budget = max(int(vmem_cap * 0.9), 16 << 20)
    while TB > 8 and _est(TB) > vmem_budget:
        TB = max(8, _round_up(TB // 2, 8))
    # TODO(synk): if param_bytes alone exceeds vmem_budget, fall back to tiling
    # the widest layer's output dim instead of keeping all params resident.

    # v7x: make sure the grid has >= 2 steps so both TensorCores get work.
    if is_v7 and pl.cdiv(B, TB) < 2:
        tb_half = _round_up(pl.cdiv(B, 2), 8)
        if 8 <= tb_half < TB:
            TB = tb_half

    grid = (pl.cdiv(B, TB),)
    vmem_limit = int(min(max(_est(TB), 16 << 20), vmem_budget))

    # ---- specs ------------------------------------------------------------
    in_specs = [pl.BlockSpec((TB, D_in), lambda i: (i, 0))]
    for p in params_k:
        # Constant block index -> keep a single resident buffer (no double
        # buffering).  Default-arg capture avoids the late-binding bug.
        in_specs.append(
            pl.BlockSpec(p.shape, lambda i, _r=p.ndim: (0,) * _r,
                         pipeline_mode=pl.Buffered(1))
        )
    out_specs = pl.BlockSpec((TB, out_w), lambda i: (i, 0))

    weight_shapes = [params_k[2 * li].shape for li in range(num_layers)]
    flops = 2 * B * sum(int(s[0]) * int(s[1]) for s in weight_shapes)
    transcendentals = B * (sum(int(s[1]) for s in weight_shapes[:-1]) + out_w)
    bytes_accessed = (int(x.size) * x.dtype.itemsize + param_bytes + B * out_w * 4)
    cost = pl.CostEstimate(flops=int(flops),
                           transcendentals=int(transcendentals),
                           bytes_accessed=int(bytes_accessed))

    kernel = _make_encoder_kernel(num_layers, d_latent, eps, matmul_dtype,
                                  split_halves)

    out = pl.pallas_call(
        kernel,
        out_shape=jax.ShapeDtypeStruct((B, out_w), jnp.float32),
        grid_spec=pltpu.PrefetchScalarGridSpec(
            num_scalar_prefetch=0,
            grid=grid,
            in_specs=in_specs,
            out_specs=out_specs,
        ),
        compiler_params=pltpu.CompilerParams(
            dimension_semantics=("parallel",),
            vmem_limit_bytes=vmem_limit,
        ),
        cost_estimate=cost,
    )(x, *params_k)

    mu = out[:, :d_latent]
    scale = out[:, d_latent:2 * d_latent]
    return mu, scale


def init_encoder_params(key, layers, dtype=jnp.float32):
    """Deterministic init matching the torch module's shapes.

    layers = [d0, d1, ..., dL]; hidden linears map d_i -> d_{i+1},
    final linear maps d_{L-1} -> 2 * d_L.
    """
    params = []
    n_linear = len(layers) - 1
    for i, (d_in, d_out) in enumerate(zip(layers, layers[1:])):
        if i == n_linear - 1:
            d_out = 2 * d_out
        key, wk, bk = jax.random.split(key, 3)
        bound = 1.0 / (d_in ** 0.5)  # torch.nn.Linear default uniform bound
        w = jax.random.uniform(wk, (d_in, d_out), dtype, -bound, bound)
        b = jax.random.uniform(bk, (d_out,), dtype, -bound, bound).reshape(1, d_out)
        params += [w, b]
    return tuple(params)


def encoder_forward_ref(x, params, eps=1e-8):
    """Plain-JAX reference for correctness checking."""
    num_layers = len(params) // 2
    h = x
    for li in range(num_layers):
        h = h @ params[2 * li] + params[2 * li + 1]
        if li < num_layers - 1:
            h = h * jax.nn.sigmoid(h)
    d = h.shape[-1] // 2
    mu, logvar = h[:, :d], h[:, d:]
    return mu, jax.nn.softplus(logvar) + eps


if __name__ == "__main__":
    key = jax.random.PRNGKey(0)
    layers = [32, 64, 16]          # Encoder(layers=[32, 64, 16], dropout=0.1)
    batch = 8

    key, pk, xk = jax.random.split(key, 3)
    params = init_encoder_params(pk, layers)
    x = jax.random.normal(xk, (batch, layers[0]), jnp.float32)

    # 1) f32 MXU path: bit-accurate against the plain-JAX reference.
    mu, scale = encoder_forward(x, params, matmul_dtype=jnp.float32)
    jax.block_until_ready((mu, scale))
    mu_ref, scale_ref = encoder_forward_ref(x, params)
    assert mu.shape == (batch, layers[-1]) and scale.shape == (batch, layers[-1])
    assert jnp.allclose(mu, mu_ref, atol=1e-5, rtol=1e-5)
    assert jnp.allclose(scale, scale_ref, atol=1e-5, rtol=1e-5)
    assert bool(jnp.all(scale > 0.0))

    # 2) Non-divisible batch (exercises clipped last block; no wrapper pad).
    key, xk2 = jax.random.split(key)
    xb = jax.random.normal(xk2, (13, layers[0]), jnp.float32)
    mu2, scale2 = encoder_forward(xb, params, matmul_dtype=jnp.float32)
    jax.block_until_ready((mu2, scale2))
    mu2_ref, scale2_ref = encoder_forward_ref(xb, params)
    assert jnp.allclose(mu2, mu2_ref, atol=1e-5, rtol=1e-5)
    assert jnp.allclose(scale2, scale2_ref, atol=1e-5, rtol=1e-5)

    # 3) Multi-step grid with single-buffered resident params (tb_cap=8).
    key, xk3 = jax.random.split(key)
    xc = jax.random.normal(xk3, (24, layers[0]), jnp.float32)
    mu3, scale3 = encoder_forward(xc, params, matmul_dtype=jnp.float32, tb_cap=8)
    jax.block_until_ready((mu3, scale3))
    mu3_ref, scale3_ref = encoder_forward_ref(xc, params)
    assert jnp.allclose(mu3, mu3_ref, atol=1e-5, rtol=1e-5)
    assert jnp.allclose(scale3, scale3_ref, atol=1e-5, rtol=1e-5)

    # 4) bf16 MXU-operand path (v6e/v7x perf mode): f32 accumulation, looser tol.
    mu4, scale4 = encoder_forward(x, params, matmul_dtype=jnp.bfloat16)
    jax.block_until_ready((mu4, scale4))
    assert jnp.allclose(mu4, mu_ref, atol=5e-2, rtol=5e-2)
    assert jnp.allclose(scale4, scale_ref, atol=5e-2, rtol=5e-2)
    assert bool(jnp.all(scale4 > 0.0))

    print("KERNEL_OK")
</pallas_src>

<mosaic_0001>
module attributes {stable_mosaic.version = 11 : i64} {
  func.func @kernel(%arg0: i32, %arg1: memref<8x32xf32, #tpu.memory_space<vmem>>, %arg2: memref<32x64xf32, #tpu.memory_space<vmem>>, %arg3: memref<1x64xf32, #tpu.memory_space<vmem>>, %arg4: memref<64x128xf32, #tpu.memory_space<vmem>>, %arg5: memref<1x128xf32, #tpu.memory_space<vmem>>, %arg6: memref<8x128xf32, #tpu.memory_space<vmem>>) attributes {dimension_semantics = [#tpu.dimension_semantics<parallel>], iteration_bounds = array<i64: 1>, scalar_prefetch = 0 : i64, scratch_operands = 0 : i64, tpu.core_type = #tpu.core_type<tc>, window_params = [{transform_indices = @transform_0, window_bounds = array<i64: 8, 32>}, {pipeline_mode = #tpu.pipeline_mode<synchronous>, transform_indices = @transform_1, window_bounds = array<i64: 32, 64>}, {pipeline_mode = #tpu.pipeline_mode<synchronous>, transform_indices = @transform_2, window_bounds = array<i64: 1, 64>}, {pipeline_mode = #tpu.pipeline_mode<synchronous>, transform_indices = @transform_3, window_bounds = array<i64: 64, 128>}, {pipeline_mode = #tpu.pipeline_mode<synchronous>, transform_indices = @transform_4, window_bounds = array<i64: 1, 128>}, {transform_indices = @transform_5, window_bounds = array<i64: 8, 128>}]} {
    %c0 = arith.constant 0 : index
    %c0_0 = arith.constant 0 : index
    %0 = vector.load %arg1[%c0, %c0_0] : memref<8x32xf32, #tpu.memory_space<vmem>>, vector<8x32xf32>
    %c0_1 = arith.constant 0 : index
    %c0_2 = arith.constant 0 : index
    %1 = vector.load %arg2[%c0_1, %c0_2] : memref<32x64xf32, #tpu.memory_space<vmem>>, vector<32x64xf32>
    %c0_3 = arith.constant 0 : index
    %c0_4 = arith.constant 0 : index
    %2 = vector.load %arg3[%c0_3, %c0_4] : memref<1x64xf32, #tpu.memory_space<vmem>>, vector<1x64xf32>
    %cst = arith.constant dense<0.000000e+00> : vector<8x64xf32>
    %3 = tpu.matmul %0, %1, %cst {dimension_numbers = #tpu.dot_dimension_numbers<[1], [0], [0], [1], [0, 0, 1, 1], [], []>} : vector<8x32xf32>, vector<32x64xf32>, vector<8x64xf32> -> vector<8x64xf32>
    %4 = vector.broadcast %2 : vector<1x64xf32> to vector<8x64xf32>
    %5 = arith.addf %3, %4 : vector<8x64xf32>
    %6 = arith.negf %5 : vector<8x64xf32>
    %7 = math.exp %6 : vector<8x64xf32>
    %cst_5 = arith.constant 1.000000e+00 : f32
    %8 = vector.broadcast %cst_5 : f32 to vector<8x64xf32>
    %9 = arith.addf %8, %7 : vector<8x64xf32>
    %10 = arith.divf %8, %9 : vector<8x64xf32>
    %11 = arith.mulf %5, %10 : vector<8x64xf32>
    %c0_6 = arith.constant 0 : index
    %c0_7 = arith.constant 0 : index
    %12 = vector.load %arg4[%c0_6, %c0_7] : memref<64x128xf32, #tpu.memory_space<vmem>>, vector<64x128xf32>
    %c0_8 = arith.constant 0 : index
    %c0_9 = arith.constant 0 : index
    %13 = vector.load %arg5[%c0_8, %c0_9] : memref<1x128xf32, #tpu.memory_space<vmem>>, vector<1x128xf32>
    %cst_10 = arith.constant dense<0.000000e+00> : vector<8x128xf32>
    %14 = tpu.matmul %11, %12, %cst_10 {dimension_numbers = #tpu.dot_dimension_numbers<[1], [0], [0], [1], [0, 0, 1, 1], [], []>} : vector<8x64xf32>, vector<64x128xf32>, vector<8x128xf32> -> vector<8x128xf32>
    %15 = vector.broadcast %13 : vector<1x128xf32> to vector<8x128xf32>
    %16 = arith.addf %14, %15 : vector<8x128xf32>
    %17 = tpu.iota {dimensions = array<i32: 1>} : vector<8x128xi32>
    %c16_i32 = arith.constant 16 : i32
    %18 = vector.broadcast %c16_i32 : i32 to vector<8x128xi32>
    %19 = arith.cmpi slt, %17, %18 : vector<8x128xi32>
    %cst_11 = arith.constant 0.000000e+00 : f32
    %20 = vector.broadcast %cst_11 : f32 to vector<8x128xf32>
    %21 = arith.maximumf %16, %20 : vector<8x128xf32>
    %22 = vector.broadcast %cst_11 : f32 to vector<8x128xf32>
    %23 = arith.subf %16, %22 : vector<8x128xf32>
    %24 = arith.cmpf one, %23, %23 : vector<8x128xf32>
    %25 = vector.broadcast %cst_11 : f32 to vector<8x128xf32>
    %26 = arith.addf %16, %25 : vector<8x128xf32>
    %27 = math.absf %23 : vector<8x128xf32>
    %cst_12 = arith.constant 0.000000e+00 : f32
    %28 = vector.broadcast %cst_12 : f32 to vector<8x128xf32>
    %29 = arith.subf %28, %27 : vector<8x128xf32>
    %30 = math.exp %29 : vector<8x128xf32>
    %31 = math.log1p %30 : vector<8x128xf32>
    %32 = arith.addf %21, %31 : vector<8x128xf32>
    %33 = arith.select %24, %26, %32 : vector<8x128xi1>, vector<8x128xf32>
    %cst_13 = arith.constant 9.99999993E-9 : f32
    %34 = vector.broadcast %cst_13 : f32 to vector<8x128xf32>
    %35 = arith.addf %33, %34 : vector<8x128xf32>
    %36 = arith.select %19, %16, %35 : vector<8x128xi1>, vector<8x128xf32>
    %c0_14 = arith.constant 0 : index
    %c0_15 = arith.constant 0 : index
    %37 = vector.load %arg6[%c0_14, %c0_15] : memref<8x128xf32, #tpu.memory_space<vmem>>, vector<8x128xf32>
    tpu.vector_store %arg6[%c0_14, %c0_15], %36 {strides = array<i32>} : memref<8x128xf32, #tpu.memory_space<vmem>>, vector<8x128xf32>,
    return
  }
  func.func @transform_0(%arg0: i32) -> (i32, i32) {
    %c0_i32 = arith.constant 0 : i32
    %c0_i32_0 = arith.constant 0 : i32
    return %arg0, %c0_i32 : i32, i32
  }
  func.func @transform_1(%arg0: i32) -> (i32, i32) {
    %c0_i32 = arith.constant 0 : i32
    %c0_i32_0 = arith.constant 0 : i32
    %c0_i32_1 = arith.constant 0 : i32
    return %c0_i32, %c0_i32_0 : i32, i32
  }
  func.func @transform_2(%arg0: i32) -> (i32, i32) {
    %c0_i32 = arith.constant 0 : i32
    %c0_i32_0 = arith.constant 0 : i32
    %c0_i32_1 = arith.constant 0 : i32
    return %c0_i32, %c0_i32_0 : i32, i32
  }
  func.func @transform_3(%arg0: i32) -> (i32, i32) {
    %c0_i32 = arith.constant 0 : i32
    %c0_i32_0 = arith.constant 0 : i32
    %c0_i32_1 = arith.constant 0 : i32
    return %c0_i32, %c0_i32_0 : i32, i32
  }
  func.func @transform_4(%arg0: i32) -> (i32, i32) {
    %c0_i32 = arith.constant 0 : i32
    %c0_i32_0 = arith.constant 0 : i32
    %c0_i32_1 = arith.constant 0 : i32
    return %c0_i32, %c0_i32_0 : i32, i32
  }
  func.func @transform_5(%arg0: i32) -> (i32, i32) {
    %c0_i32 = arith.constant 0 : i32
    %c0_i32_0 = arith.constant 0 : i32
    return %arg0, %c0_i32 : i32, i32
  }
}

</mosaic_0001>

<bundles_post_ra>
// kernel: encoder_forward.1
= control target key start
LH: loop header
LB: loop body
LE: loop exit
PB: predicated region body
PF: predicated region fallthrough
CT: control target
= control target key end

     0   :  { %v289_v0 = vmov 0.0   ;;  %vm290_vm0 = vmmov 0   ;;  %vm32_vm1 = vcmask 261120   ;;  %vm128_vm2 = vcmask 523264   ;;  %s369_s1 = inlined_call_operand.vmem [shape: f32[32,64], index: 1, kind: input, shape index: {}]   ;;  %s370_s0 = inlined_call_operand.vmem [shape: f32[8,32], index: 0, kind: input, shape index: {}]   ;;  %s371_s3 = inlined_call_operand.vmem [shape: f32[64,128], index: 3, kind: input, shape index: {}]   ;;  %s372_s2 = inlined_call_operand.vmem [shape: f32[1,64], index: 2, kind: input, shape index: {}]   ;;  %s373_s4 = inlined_call_operand.vmem [shape: f32[1,128], index: 4, kind: input, shape index: {}]   ;;  %s374_s5 = inlined_call_operand.vmem [shape: f32[8,128], index: 5, kind: output, shape index: {}]  }
   0x1   :  { %249 = vmatprep.subr.mxu0 %v289_v0  ;;  %v24_v1 = vld [vmem:[%s369_s1 + $0x18] sm:$0xff]  ;;  %v23_v2 = vld [vmem:[%s369_s1 + $0x10] sm:$0xff]  ;;  %257 = vmatprep.mubr.msk.f32.mxu0 %vm290_vm0, %v289_v0  ;;  %v22_v3 = vld [vmem:[%s369_s1 + $0x8] sm:$0xff]  ;;  %v202_v34 = vlaneseq }
   0x2   :  { %250 = vmatpush3.msra.mxu0 %v24_v1  ;;  %260 = vmatprep.subr.mxu1 %v289_v0  ;;  %v21_v4 = vld [vmem:[%s369_s1] sm:$0xff]  ;;  %v120_v6 = vld [vmem:[%s371_s3 + $0x38] sm:$0xff]  ;;  %v119_v7 = vld [vmem:[%s371_s3 + $0x30] sm:$0xff] }
   0x3   :  { %251 = vmatprep.subr.mxu0 %v289_v0  ;;  %276 = vmatprep.mubr.msk.f32.mxu1 %vm290_vm0, %v289_v0  ;;  %v20_v5 = vld [vmem:[%s370_s0] sm:$0xff]  ;;  %v118_v8 = vld [vmem:[%s371_s3 + $0x28] sm:$0xff]  ;;  %v116_v10 = vld [vmem:[%s371_s3 + $0x18] sm:$0xff]  ;;  %v203_v39 = vand.u32 127, %v202_v34 }
   0x4   :  { %252 = vmatpush3.msra.mxu0 %v23_v2  ;;  %261 = vmatpush3.msra.mxu1 %v120_v6  ;;  %v117_v9 = vld [vmem:[%s371_s3 + $0x20] sm:$0xff]  ;;  %v115_v11 = vld [vmem:[%s371_s3 + $0x10] sm:$0xff]  ;;  %v114_v12 = vld [vmem:[%s371_s3 + $0x8] sm:$0xff] }
   0x5   :  { %253 = vmatprep.subr.mxu0 %v289_v0  ;;  %262 = vmatprep.subr.mxu1 %v289_v0  ;;  %v113_v13 = vld [vmem:[%s371_s3] sm:$0xff]  ;;  %vm204_vm5 = vcmp.lt.s32.totalorder %v203_v39, 16 }
   0x6   :  { %254 = vmatpush3.msra.mxu0 %v22_v3  ;;  %263 = vmatpush3.msra.mxu1 %v119_v7  ;;  %v230_v14 = vld [vmem:[%s372_s2] ss:$0 sm:$0xff] }
   0x7   :  { %255 = vmatprep.subr.mxu0 %v289_v0  ;;  %264 = vmatprep.subr.mxu1 %v289_v0  ;;  %v233_v23 = vld [vmem:[%s373_s4] ss:$0 sm:$0xff] }
   0x8   :  { %256 = vmatpush3.msra.mxu0 %v21_v4  ;;  %265 = vmatpush3.msra.mxu1 %v118_v8 }
   0x9   :  { %258 = vmatmul.mubr.msk.f32.vlgmr.msra.gmra.mxu0 %vm32_vm1, %v20_v5  ;;  %266 = vmatprep.subr.mxu1 %v289_v0 }
   0xa   :  { %267 = vmatpush3.msra.mxu1 %v117_v9 }
   0xb   :  { %268 = vmatprep.subr.mxu1 %v289_v0 }
   0xc   :  { %269 = vmatpush3.msra.mxu1 %v116_v10 }
   0xd   :  { %270 = vmatprep.subr.mxu1 %v289_v0 }
   0xe   :  { %271 = vmatpush3.msra.mxu1 %v115_v11 }
   0xf   :  { %272 = vmatprep.subr.mxu1 %v289_v0 }
  0x10   :  { %273 = vmatpush3.msra.mxu1 %v114_v12 }
  0x11   :  { %274 = vmatprep.subr.mxu1 %v289_v0 }
  0x12   :  { %275 = vmatpush3.msra.mxu1 %v113_v13 }
  0xc9   :  { %v102_v15 = vpop.f32.mrf.mxu0 }
  0xca   :  { %v103_v16 = vadd.f32 %v230_v14, %v102_v15 }
  0xcb   :  { %v259_v17 = vpop.f32.mrf.mxu0 }
  0xcc   :  { %v232_v18 = vmul.f32 -1.442695, %v103_v16 }
  0xce   :  { %281 = vpow2.f32 %v232_v18 }
  0xdb   :  { %v282_v19 = vpop.eup %281 }
  0xdc   :  { %v109_v20 = vadd.f32 1.0, %v282_v19 }
  0xde   :  { %283 = vrcp.f32 %v109_v20 }
  0xeb   :  { %v284_v21 = vpop.eup %283 }
  0xec   :  { %v112_v22 = vmul.f32 %v284_v21, %v103_v16 }
  0xee   :  { %277 = vmatmul.mubr.msk.f32.vlgmr.msra.gmra.mxu1 %vm128_vm2, %v112_v22 }
 0x1ae   :  { %v198_v24 = vpop.f32.mrf.mxu1 }
 0x1af   :  { %v199_v25 = vadd.f32 %v233_v23, %v198_v24 }
 0x1b0   :  { %v278_v26 = vpop.f32.mrf.mxu1 }
 0x1b1   :  { %v208_v27 = vand.u32 2147483647, %v199_v25  ;;  %v205_v40 = vmax.f32 %v199_v25, 0.0  ;;  %vm206_vm4 = vcmp.ne.f32.partialorder %v199_v25, %v199_v25 }
 0x1b3   :  { %v209_v28 = vsub.f32 0.0, %v208_v27 }
 0x1b5   :  { %v210_v29 = vmul.f32 1.442695, %v209_v28 }
 0x1b7   :  { %285 = vpow2.f32 %v210_v29 }
 0x1c4   :  { %v286_v30 = vpop.eup %285 }
 0x1c5   :  { %v212_v31 = vadd.f32 1.0, %v286_v30  ;;  %v215_v32 = vmul.f32 -0.5, %v286_v30  ;;  %v218_v35 = vand.u32 2147483647, %v286_v30 }
 0x1c7   :  { %287 = vlog2.f32 %v212_v31  ;;  %v216_v33 = vadd.f32 1.0, %v215_v32  ;;  %vm219_vm3 = vcmp.lt.f32.partialorder %v218_v35, 0.0004427343 }
 0x1c9   :  { %v217_v38 = vmul.f32 %v286_v30, %v216_v33 }
 0x1d4   :  { %v288_v36 = vpop.eup %287 }
 0x1d5   :  { %v214_v37 = vmul.f32 0.6931472, %v288_v36 }
 0x1d7   :  { %v220_v41 = vsel %vm219_vm3, %v217_v38, %v214_v37 }
 0x1d8   :  { %v221_v42 = vadd.f32 %v220_v41, %v205_v40 }
 0x1da   :  { %v222_v43 = vsel %vm206_vm4, %v199_v25, %v221_v42 }
 0x1db   :  { %v223_v44 = vadd.f32 1e-08, %v222_v43 }
 0x1dd   :  { %v224_v45 = vsel %vm204_vm5, %v199_v25, %v223_v44 }
 0x1de   :  { %225 = vst [vmem:[%s374_s5] sm:$0xff] %v224_v45 }

</bundles_post_ra>
